<compile_context>
chip_gen: v7x
topology: tpu7x:2x2x1
jax: 0.10.0
libtpu: 0.0.40
codegen_flags: <defaults>
</compile_context>

<pallas_src>
import math

import jax
import jax.numpy as jnp
from jax.experimental import pallas as pl
from jax.experimental.pallas import tpu as pltpu

_LN_EPS = 1e-5


def _make_kernel(compute_dtype):
    def kernel(x_ref, w_ref, b_ref, o_ref):
        # x_ref: (rb, 2, wo, 2C)  raw tokens for rb image-row pairs
        # w_ref: (4C, out_p)      repacked conv weight (gamma folded in)
        # b_ref: (1, out_p)       bias (beta folded in), f32
        # o_ref: (rows, out_p)    rows = rb * wo
        rb, _, wo, two_c = x_ref.shape
        C = two_c // 2
        rows = rb * wo
        out_p = o_ref.shape[1]

        def norm_chunk(ky, kx):
            # chunk for 2x2-window position (ky, kx): (rb, wo, C) -> (rows, C)
            xc = x_ref[:, ky, :, kx * C:(kx + 1) * C]
            xc = xc.reshape(rows, C).astype(jnp.float32)
            mu = jnp.mean(xc, axis=-1, keepdims=True)
            m2 = jnp.mean(xc * xc, axis=-1, keepdims=True)
            xn = (xc - mu) * jax.lax.rsqrt(m2 - mu * mu + _LN_EPS)
            return xn.astype(compute_dtype)

        pos = ((0, 0), (0, 1), (1, 0), (1, 1))  # matches weight row order (ky,kx,c)
        if C >= 128:
            # Per-chunk accumulated dots: no (rows, 4C) concat intermediate,
            # VPU layernorm of chunk k+1 overlaps MXU work on chunk k.
            acc = jnp.zeros((rows, out_p), jnp.float32)
            for k, (ky, kx) in enumerate(pos):
                acc = acc + jnp.dot(norm_chunk(ky, kx),
                                    w_ref[k * C:(k + 1) * C, :],
                                    preferred_element_type=jnp.float32)
        else:
            # Small C: fuse into one K=4C dot so the MXU K dim is not starved.
            xn_all = jnp.concatenate([norm_chunk(ky, kx) for ky, kx in pos],
                                     axis=-1)
            acc = jnp.dot(xn_all, w_ref[...], preferred_element_type=jnp.float32)

        o_ref[...] = (acc + b_ref[...].astype(jnp.float32)).astype(o_ref.dtype)

    return kernel


def _pick_rb(R, wo, C, out_p, x_itemsize, w_itemsize,
             target_rows=512, vmem_budget=12 * 1024 * 1024):
    """Choose image-row-pairs per block so tiles stay well under the scoped
    VMEM limit (double-buffering survives on v5e 16MiB-default / v7x 64MiB)."""
    fixed = 2 * (4 * C * out_p * w_itemsize) + 2 * out_p * 4     # weight + bias
    per_row = (2 * 4 * C * x_itemsize        # input block, double buffered
               + 2 * out_p * 4               # output block, double buffered
               + 4 * C * (4 + w_itemsize))   # in-kernel temporaries (rough)
    max_rows = max(wo, (vmem_budget - fixed) // max(per_row, 1))
    rows = int(min(target_rows, max_rows))
    rb = max(1, rows // wo)
    # keep the output block's sublane dim (rb*wo) a multiple of 8
    step = 8 // math.gcd(wo, 8)
    rb = max(step, (rb // step) * step)
    return min(rb, R)


def patch_merging(x, H, W, gamma, beta, conv_w, conv_b, *, rb=None,
                  compute_dtype=jnp.bfloat16):
    """CrossFormer PatchMerging forward (patch_size=[2] case).

    x: (B, H*W, C) -> (B, (H//2)*(W//2), out_dim), out_dim = conv_w.shape[0].
    """
    B, L, C = x.shape
    assert L == H * W, "input feature has wrong size"
    assert H % 2 == 0 and W % 2 == 0, f"x size ({H}*{W}) are not even."
    out_dim = conv_w.shape[0]                 # conv_w: (out_dim, C, 2, 2)
    wo = W // 2
    R = B * (H // 2)                          # image-row pairs
    N = R * wo                                # output tokens

    # ---- trace-time weight repack: 2x2/stride-2 conv == matmul ----
    # out[o] = sum_{ky,kx,c} w[o,c,ky,kx] * patch[ky,kx,c]
    wm = conv_w.transpose(2, 3, 1, 0).reshape(4 * C, out_dim).astype(jnp.float32)
    # Fold LayerNorm affine into weight/bias: (xn*g + b) @ wm == xn @ (g*wm) + b4 @ wm
    g4 = jnp.tile(gamma.astype(jnp.float32), 4)
    b4 = jnp.tile(beta.astype(jnp.float32), 4)
    w_eff = wm * g4[:, None]
    b_eff = conv_b.astype(jnp.float32) + b4 @ wm

    # Lane-dense output: pad out_dim up to a multiple of 128 (stripped below).
    out_p = ((out_dim + 127) // 128) * 128
    if out_p != out_dim:
        w_eff = jnp.pad(w_eff, ((0, 0), (0, out_p - out_dim)))
        b_eff = jnp.pad(b_eff, (0, out_p - out_dim))
    w_eff = w_eff.astype(compute_dtype)
    b_eff = b_eff.reshape(1, out_p)

    # FREE reshape: (B, H*W, C) -> (R, 2, W/2, 2C).  Adjacent column pairs are
    # merged into the channel dim and image-row pairs into axis 1, so the 2x2
    # gather inside the kernel needs only static int / lane slices.
    x4 = x.reshape(R, 2, wo, 2 * C)

    if rb is None:
        rb = _pick_rb(R, wo, C, out_p, x.dtype.itemsize,
                      jnp.dtype(compute_dtype).itemsize)
    else:
        step = 8 // math.gcd(wo, 8)
        rb = min(max(step, (rb // step) * step), R)
    rows = rb * wo
    grid = (pl.cdiv(R, rb),)   # ragged last block handled by Pallas masking

    out = pl.pallas_call(
        _make_kernel(compute_dtype),
        out_shape=jax.ShapeDtypeStruct((N, out_p), x.dtype),
        grid_spec=pltpu.PrefetchScalarGridSpec(
            num_scalar_prefetch=0,
            grid=grid,
            in_specs=[
                pl.BlockSpec((rb, 2, wo, 2 * C), lambda i: (i, 0, 0, 0)),
                # Constant operands (weight/bias). Single-buffering them
                # (pipeline_mode=pl.Buffered(1)) would reclaim one weight
                # buffer of VMEM on v7x; kept default for portability.
                pl.BlockSpec((4 * C, out_p), lambda i: (0, 0)),
                pl.BlockSpec((1, out_p), lambda i: (0, 0)),
            ],
            out_specs=pl.BlockSpec((rows, out_p), lambda i: (i, 0)),
        ),
        compiler_params=pltpu.CompilerParams(
            dimension_semantics=("parallel",),
            vmem_limit_bytes=32 * 1024 * 1024),
    )(x4, w_eff, b_eff)

    if out_p != out_dim:
        out = out[:, :out_dim]
    return out.reshape(B, (H // 2) * wo, out_dim)


def _reference(x, H, W, gamma, beta, conv_w, conv_b):
    """Pure-JAX reference mirroring the PyTorch forward exactly."""
    B, L, C = x.shape
    mu = jnp.mean(x, axis=-1, keepdims=True)
    var = jnp.mean((x - mu) ** 2, axis=-1, keepdims=True)
    xn = (x - mu) / jnp.sqrt(var + _LN_EPS) * gamma + beta
    xi = xn.reshape(B, H, W, C).transpose(0, 3, 1, 2)   # NCHW
    y = jax.lax.conv_general_dilated(
        xi, conv_w, window_strides=(2, 2), padding="VALID",
        dimension_numbers=("NCHW", "OIHW", "NCHW"))
    y = y + conv_b.reshape(1, -1, 1, 1)
    B_, O, Ho, Wo = y.shape
    return y.reshape(B_, O, Ho * Wo).transpose(0, 2, 1)


if __name__ == "__main__":
    key = jax.random.PRNGKey(0)

    def run_case(idx, B, H, W, dim, rb, compute_dtype, tol, name):
        out_dim = 2 * dim  # patch_size=[2] -> out_dim = 2*dim, padding = 0
        k = jax.random.fold_in(key, idx)
        kx, kw, kb, kg, kbt = jax.random.split(k, 5)
        x = jax.random.normal(kx, (B, H * W, dim), jnp.float32)
        gamma = 1.0 + 0.1 * jax.random.normal(kg, (dim,), jnp.float32)
        beta = 0.05 * jax.random.normal(kbt, (dim,), jnp.float32)
        conv_w = jax.random.normal(kw, (out_dim, dim, 2, 2), jnp.float32) * 0.05
        conv_b = jax.random.normal(kb, (out_dim,), jnp.float32) * 0.01

        out = patch_merging(x, H, W, gamma, beta, conv_w, conv_b,
                            rb=rb, compute_dtype=compute_dtype)
        out = jax.block_until_ready(out)

        ref = _reference(x, H, W, gamma, beta, conv_w, conv_b)
        assert out.shape == (B, (H // 2) * (W // 2), out_dim), (name, out.shape)
        assert jnp.allclose(out, ref, atol=tol, rtol=tol), f"mismatch: {name}"

    # Exercise: fused-K path with padded lane-dense output (C=32, out_dim=64
    # -> padded to 128), multi-step grid (rb=2 -> 4 steps), bf16 and f32 MXU
    # paths, and the per-chunk accumulate path (C=128).
    run_case(0, 2, 8, 8, 32, 2, jnp.bfloat16, 2e-2, "bf16_C32")
    run_case(1, 2, 8, 8, 32, None, jnp.float32, 1e-3, "f32_C32")
    run_case(2, 2, 8, 8, 128, 2, jnp.bfloat16, 3e-2, "bf16_C128")

    print("KERNEL_OK")
</pallas_src>

<mosaic_0001>
module attributes {stable_mosaic.version = 11 : i64} {
  func.func @kernel(%arg0: i32, %arg1: memref<2x2x4x64xf32, #tpu.memory_space<vmem>>, %arg2: memref<128x128xbf16, #tpu.memory_space<vmem>>, %arg3: memref<1x128xf32, #tpu.memory_space<vmem>>, %arg4: memref<8x128xf32, #tpu.memory_space<vmem>>) attributes {dimension_semantics = [#tpu.dimension_semantics<parallel>], iteration_bounds = array<i64: 4>, scalar_prefetch = 0 : i64, scratch_operands = 0 : i64, tpu.core_type = #tpu.core_type<tc>, window_params = [{transform_indices = @transform_0, window_bounds = array<i64: 2, 2, 4, 64>}, {pipeline_mode = #tpu.pipeline_mode<synchronous>, transform_indices = @transform_1, window_bounds = array<i64: 128, 128>}, {pipeline_mode = #tpu.pipeline_mode<synchronous>, transform_indices = @transform_2, window_bounds = array<i64: 1, 128>}, {transform_indices = @transform_3, window_bounds = array<i64: 8, 128>}]} {
    %c0 = arith.constant 0 : index
    %c0_0 = arith.constant 0 : index
    %c0_1 = arith.constant 0 : index
    %c0_2 = arith.constant 0 : index
    %0 = vector.load %arg1[%c0, %c0_0, %c0_1, %c0_2] : memref<2x2x4x64xf32, #tpu.memory_space<vmem>>, vector<2x1x4x32xf32>
    %1 = vector.shape_cast %0 : vector<2x1x4x32xf32> to vector<2x4x32xf32>
    %2 = vector.shape_cast %1 : vector<2x4x32xf32> to vector<8x32xf32>
    %cst = arith.constant dense<0.000000e+00> : vector<8xf32>
    %3 = vector.multi_reduction <add>, %2, %cst [1] : vector<8x32xf32> to vector<8xf32>
    %4 = vector.shape_cast %3 : vector<8xf32> to vector<8x1xf32>
    %cst_3 = arith.constant 3.200000e+01 : f32
    %5 = vector.broadcast %cst_3 : f32 to vector<8x1xf32>
    %6 = arith.divf %4, %5 : vector<8x1xf32>
    %7 = arith.mulf %2, %2 : vector<8x32xf32>
    %cst_4 = arith.constant dense<0.000000e+00> : vector<8xf32>
    %8 = vector.multi_reduction <add>, %7, %cst_4 [1] : vector<8x32xf32> to vector<8xf32>
    %9 = vector.shape_cast %8 : vector<8xf32> to vector<8x1xf32>
    %cst_5 = arith.constant 3.200000e+01 : f32
    %10 = vector.broadcast %cst_5 : f32 to vector<8x1xf32>
    %11 = arith.divf %9, %10 : vector<8x1xf32>
    %12 = vector.broadcast %6 : vector<8x1xf32> to vector<8x32xf32>
    %13 = arith.subf %2, %12 : vector<8x32xf32>
    %14 = arith.mulf %6, %6 : vector<8x1xf32>
    %15 = arith.subf %11, %14 : vector<8x1xf32>
    %cst_6 = arith.constant 9.99999974E-6 : f32
    %16 = vector.broadcast %cst_6 : f32 to vector<8x1xf32>
    %17 = arith.addf %15, %16 : vector<8x1xf32>
    %18 = math.rsqrt %17 : vector<8x1xf32>
    %19 = vector.broadcast %18 : vector<8x1xf32> to vector<8x32xf32>
    %20 = arith.mulf %13, %19 : vector<8x32xf32>
    %21 = arith.truncf %20 : vector<8x32xf32> to vector<8x32xbf16>
    %c0_7 = arith.constant 0 : index
    %c0_8 = arith.constant 0 : index
    %c0_9 = arith.constant 0 : index
    %c32 = arith.constant 32 : index
    %22 = vector.load %arg1[%c0_7, %c0_8, %c0_9, %c32] : memref<2x2x4x64xf32, #tpu.memory_space<vmem>>, vector<2x1x4x32xf32>
    %23 = vector.shape_cast %22 : vector<2x1x4x32xf32> to vector<2x4x32xf32>
    %24 = vector.shape_cast %23 : vector<2x4x32xf32> to vector<8x32xf32>
    %cst_10 = arith.constant dense<0.000000e+00> : vector<8xf32>
    %25 = vector.multi_reduction <add>, %24, %cst_10 [1] : vector<8x32xf32> to vector<8xf32>
    %26 = vector.shape_cast %25 : vector<8xf32> to vector<8x1xf32>
    %cst_11 = arith.constant 3.200000e+01 : f32
    %27 = vector.broadcast %cst_11 : f32 to vector<8x1xf32>
    %28 = arith.divf %26, %27 : vector<8x1xf32>
    %29 = arith.mulf %24, %24 : vector<8x32xf32>
    %cst_12 = arith.constant dense<0.000000e+00> : vector<8xf32>
    %30 = vector.multi_reduction <add>, %29, %cst_12 [1] : vector<8x32xf32> to vector<8xf32>
    %31 = vector.shape_cast %30 : vector<8xf32> to vector<8x1xf32>
    %cst_13 = arith.constant 3.200000e+01 : f32
    %32 = vector.broadcast %cst_13 : f32 to vector<8x1xf32>
    %33 = arith.divf %31, %32 : vector<8x1xf32>
    %34 = vector.broadcast %28 : vector<8x1xf32> to vector<8x32xf32>
    %35 = arith.subf %24, %34 : vector<8x32xf32>
    %36 = arith.mulf %28, %28 : vector<8x1xf32>
    %37 = arith.subf %33, %36 : vector<8x1xf32>
    %cst_14 = arith.constant 9.99999974E-6 : f32
    %38 = vector.broadcast %cst_14 : f32 to vector<8x1xf32>
    %39 = arith.addf %37, %38 : vector<8x1xf32>
    %40 = math.rsqrt %39 : vector<8x1xf32>
    %41 = vector.broadcast %40 : vector<8x1xf32> to vector<8x32xf32>
    %42 = arith.mulf %35, %41 : vector<8x32xf32>
    %43 = arith.truncf %42 : vector<8x32xf32> to vector<8x32xbf16>
    %c0_15 = arith.constant 0 : index
    %c1 = arith.constant 1 : index
    %c0_16 = arith.constant 0 : index
    %c0_17 = arith.constant 0 : index
    %44 = vector.load %arg1[%c0_15, %c1, %c0_16, %c0_17] : memref<2x2x4x64xf32, #tpu.memory_space<vmem>>, vector<2x1x4x32xf32>
    %45 = vector.shape_cast %44 : vector<2x1x4x32xf32> to vector<2x4x32xf32>
    %46 = vector.shape_cast %45 : vector<2x4x32xf32> to vector<8x32xf32>
    %cst_18 = arith.constant dense<0.000000e+00> : vector<8xf32>
    %47 = vector.multi_reduction <add>, %46, %cst_18 [1] : vector<8x32xf32> to vector<8xf32>
    %48 = vector.shape_cast %47 : vector<8xf32> to vector<8x1xf32>
    %cst_19 = arith.constant 3.200000e+01 : f32
    %49 = vector.broadcast %cst_19 : f32 to vector<8x1xf32>
    %50 = arith.divf %48, %49 : vector<8x1xf32>
    %51 = arith.mulf %46, %46 : vector<8x32xf32>
    %cst_20 = arith.constant dense<0.000000e+00> : vector<8xf32>
    %52 = vector.multi_reduction <add>, %51, %cst_20 [1] : vector<8x32xf32> to vector<8xf32>
    %53 = vector.shape_cast %52 : vector<8xf32> to vector<8x1xf32>
    %cst_21 = arith.constant 3.200000e+01 : f32
    %54 = vector.broadcast %cst_21 : f32 to vector<8x1xf32>
    %55 = arith.divf %53, %54 : vector<8x1xf32>
    %56 = vector.broadcast %50 : vector<8x1xf32> to vector<8x32xf32>
    %57 = arith.subf %46, %56 : vector<8x32xf32>
    %58 = arith.mulf %50, %50 : vector<8x1xf32>
    %59 = arith.subf %55, %58 : vector<8x1xf32>
    %cst_22 = arith.constant 9.99999974E-6 : f32
    %60 = vector.broadcast %cst_22 : f32 to vector<8x1xf32>
    %61 = arith.addf %59, %60 : vector<8x1xf32>
    %62 = math.rsqrt %61 : vector<8x1xf32>
    %63 = vector.broadcast %62 : vector<8x1xf32> to vector<8x32xf32>
    %64 = arith.mulf %57, %63 : vector<8x32xf32>
    %65 = arith.truncf %64 : vector<8x32xf32> to vector<8x32xbf16>
    %c0_23 = arith.constant 0 : index
    %c1_24 = arith.constant 1 : index
    %c0_25 = arith.constant 0 : index
    %c32_26 = arith.constant 32 : index
    %66 = vector.load %arg1[%c0_23, %c1_24, %c0_25, %c32_26] : memref<2x2x4x64xf32, #tpu.memory_space<vmem>>, vector<2x1x4x32xf32>
    %67 = vector.shape_cast %66 : vector<2x1x4x32xf32> to vector<2x4x32xf32>
    %68 = vector.shape_cast %67 : vector<2x4x32xf32> to vector<8x32xf32>
    %cst_27 = arith.constant dense<0.000000e+00> : vector<8xf32>
    %69 = vector.multi_reduction <add>, %68, %cst_27 [1] : vector<8x32xf32> to vector<8xf32>
    %70 = vector.shape_cast %69 : vector<8xf32> to vector<8x1xf32>
    %cst_28 = arith.constant 3.200000e+01 : f32
    %71 = vector.broadcast %cst_28 : f32 to vector<8x1xf32>
    %72 = arith.divf %70, %71 : vector<8x1xf32>
    %73 = arith.mulf %68, %68 : vector<8x32xf32>
    %cst_29 = arith.constant dense<0.000000e+00> : vector<8xf32>
    %74 = vector.multi_reduction <add>, %73, %cst_29 [1] : vector<8x32xf32> to vector<8xf32>
    %75 = vector.shape_cast %74 : vector<8xf32> to vector<8x1xf32>
    %cst_30 = arith.constant 3.200000e+01 : f32
    %76 = vector.broadcast %cst_30 : f32 to vector<8x1xf32>
    %77 = arith.divf %75, %76 : vector<8x1xf32>
    %78 = vector.broadcast %72 : vector<8x1xf32> to vector<8x32xf32>
    %79 = arith.subf %68, %78 : vector<8x32xf32>
    %80 = arith.mulf %72, %72 : vector<8x1xf32>
    %81 = arith.subf %77, %80 : vector<8x1xf32>
    %cst_31 = arith.constant 9.99999974E-6 : f32
    %82 = vector.broadcast %cst_31 : f32 to vector<8x1xf32>
    %83 = arith.addf %81, %82 : vector<8x1xf32>
    %84 = math.rsqrt %83 : vector<8x1xf32>
    %85 = vector.broadcast %84 : vector<8x1xf32> to vector<8x32xf32>
    %86 = arith.mulf %79, %85 : vector<8x32xf32>
    %87 = arith.truncf %86 : vector<8x32xf32> to vector<8x32xbf16>
    %88 = tpu.concatenate %21, %43, %65, %87 in 1 : vector<8x32xbf16>, vector<8x32xbf16>, vector<8x32xbf16>, vector<8x32xbf16> -> vector<8x128xbf16>
    %c0_32 = arith.constant 0 : index
    %c0_33 = arith.constant 0 : index
    %89 = vector.load %arg2[%c0_32, %c0_33] : memref<128x128xbf16, #tpu.memory_space<vmem>>, vector<128x128xbf16>
    %cst_34 = arith.constant dense<0.000000e+00> : vector<8x128xf32>
    %90 = tpu.matmul %88, %89, %cst_34 {dimension_numbers = #tpu.dot_dimension_numbers<[1], [0], [0], [1], [0, 0, 1, 1], [], []>} : vector<8x128xbf16>, vector<128x128xbf16>, vector<8x128xf32> -> vector<8x128xf32>
    %c0_35 = arith.constant 0 : index
    %c0_36 = arith.constant 0 : index
    %91 = vector.load %arg3[%c0_35, %c0_36] : memref<1x128xf32, #tpu.memory_space<vmem>>, vector<1x128xf32>
    %92 = vector.broadcast %91 : vector<1x128xf32> to vector<8x128xf32>
    %93 = arith.addf %90, %92 : vector<8x128xf32>
    %c0_37 = arith.constant 0 : index
    %c0_38 = arith.constant 0 : index
    %94 = vector.load %arg4[%c0_37, %c0_38] : memref<8x128xf32, #tpu.memory_space<vmem>>, vector<8x128xf32>
    tpu.vector_store %arg4[%c0_37, %c0_38], %93 {strides = array<i32>} : memref<8x128xf32, #tpu.memory_space<vmem>>, vector<8x128xf32>,
    return
  }
  func.func @transform_0(%arg0: i32) -> (i32, i32, i32, i32) {
    %c0_i32 = arith.constant 0 : i32
    %c0_i32_0 = arith.constant 0 : i32
    %c0_i32_1 = arith.constant 0 : i32
    %c0_i32_2 = arith.constant 0 : i32
    return %arg0, %c0_i32, %c0_i32_0, %c0_i32_1 : i32, i32, i32, i32
  }
  func.func @transform_1(%arg0: i32) -> (i32, i32) {
    %c0_i32 = arith.constant 0 : i32
    %c0_i32_0 = arith.constant 0 : i32
    %c0_i32_1 = arith.constant 0 : i32
    return %c0_i32, %c0_i32_0 : i32, i32
  }
  func.func @transform_2(%arg0: i32) -> (i32, i32) {
    %c0_i32 = arith.constant 0 : i32
    %c0_i32_0 = arith.constant 0 : i32
    %c0_i32_1 = arith.constant 0 : i32
    return %c0_i32, %c0_i32_0 : i32, i32
  }
  func.func @transform_3(%arg0: i32) -> (i32, i32) {
    %c0_i32 = arith.constant 0 : i32
    %c0_i32_0 = arith.constant 0 : i32
    return %arg0, %c0_i32 : i32, i32
  }
}

</mosaic_0001>

<bundles_post_ra>
// kernel: tpu_custom_call.1
= control target key start
LH: loop header
LB: loop body
LE: loop exit
PB: predicated region body
PF: predicated region fallthrough
CT: control target
= control target key end

     0   :  { %8 = vsyncpa [#allocation3], 0  ;;  %s1249_s0 = inlined_call_operand.hbm [shape: f32[8,2,4,64], index: 0, kind: input, shape index: {}]   ;;  %s1250_s1 = inlined_call_operand.hbm [shape: bf16[128,128], index: 1, kind: input, shape index: {}]   ;;  %s1251_s2 = inlined_call_operand.vmem [shape: f32[1,128], index: 2, kind: input, shape index: {}]   ;;  %s1252_s3 = inlined_call_operand.hbm [shape: f32[32,128], index: 3, kind: output, shape index: {}]  }
   0x1   :  { %10 = vsyncpa [#allocation3 + $0x1], 0 }
   0x2   :  { %11 = vsyncpa [#allocation6], 0 }
   0x3   :  { %12 = vsyncpa [#allocation4], 0 }
   0x4   :  { %14 = vsyncpa [#allocation4 + $0x1], 0  ;;  %s990_s12 = smov 0   ;;  %s992_s13 = smov 0  }
   0x5   :  { %s994_s14 = smov 0   ;;  %s996_s15 = smov 0  }
   0x6 LB: > { %s1011_s16 = sadd.s32 4294967295, %s957_s15   ;;  %s688_s17 = sadd.s32 4294967294, %s957_s15   ;;  %s957_s15 = sphi %s996_s15, %s1271_s15   ;;  %s953_s14 = sphi %s994_s14, %s1270_s14   ;;  %s949_s13 = sphi %s992_s13, %s1269_s13   ;;  %s945_s12 = sphi %s990_s12, %s1268_s12  }
   0x7   : > { %p40_p0 = scmp.ne.s32.totalorder %s949_s13, %s945_s12  ;;  %p1253_p1 = scmp.eq.s32.totalorder %s1011_s16, 0 }
   0x8   : > { %p112_p3 = scmp.eq.s32.totalorder %s688_s17, 3  ;;  %p689_p5 = scmp.ge.s32.totalorder %s957_s15, 1 }
   0x9   : > { %p1020_p4 = por %p1253_p1, %p40_p0  ;;  %p119_p7 = scmp.lt.s32.totalorder %s957_s15, 5 }
   0xa   : > { %p1025_p6 = por %p112_p3, %p40_p0  ;;  %s959_s21 = smov [#allocation5]  }
   0xb   : > { %s1256_s18 = scalar_select %p1020_p4, 1, 0 }
   0xc   : > { %s1257_s19 = scalar_select %p1025_p6, 1, 0 }
   0xd   : > { %p1030_p8 = pnand %p689_p5, %p119_p7  ;;  %s131_s22 = sshll.u32 %s959_s21, 4  ;;  %s132_s22 = int_to_ptr.vmem [resolvable:$true] %s131_s22 }
   0xe   : > { %s1043_s24 = sadd.s32 1, %s957_s15   ;;  %s27_s25 = sadd.s32 1, %s953_s14 }
   0xf   : > { %s1258_s20 = scalar_select %p1030_p8, 1, 0 }
  0x10   : > { %p754_p9 = pneg %p1030_p8  ;;  %s24_s26 = ssub.s32 %s957_s15, %s1043_s24 }
  0x11   : > { %s829_s29 = scalar_lea.hbm %s1250_s1, 1024 }
  0x12   : > { %p1038_p10 = pnand %p754_p9, %p1253_p1  ;;  %p830_p11 = scmp.ne.s32.totalorder %s1250_s1, %s829_s29 }
  0x13   : > { %p836_p3 = scmp.lt.u32.totalorder %s829_s29, %s1250_s1 }
  0x14   : > { %p831_p12 = pneg %p1038_p10 }
  0x16   : > { %p832_p13 = pnand %p831_p12, %p830_p11 }
  0x18   : > { %p833_p0 = pneg %p832_p13 }
  0x1a   : > { %p838_p5 = pnand %p836_p3, %p833_p0 }
  0x1c   : > { %841 = shalt.err (!%p838_p5)
}
  0x1d   : > { %s842_s7 = scalar_lea.vmem %s132_s22, 1024  ;;  %p850_p2 = scmp.lt.s32.totalorder %s132_s22, %s132_s22 }
  0x1e   : > { %p843_p7 = scmp.ne.s32.totalorder %s132_s22, %s842_s7  ;;  %p851_p6 = scmp.lt.s32.totalorder %s842_s7, %s842_s7 }
  0x20   : > { %p845_p9 = pnand %p843_p7, %p831_p12  ;;  %p852_p4 = por %p851_p6, %p850_p2 }
  0x22   : > { %p846_p1 = pneg %p845_p9 }
  0x24   : > { %p853_p8 = pnand %p852_p4, %p846_p1 }
  0x26   : > { %856 = shalt.err (!%p853_p8)
}
  0x27   : > { %s960_s8 = smov 64   ;;  %s961_s9 = smov 4  }
  0x28   : > { %757 = dma.hbm_to_vmem [thread:$0]  (!%p1038_p10), %s1250_s1, 1024, %s132_s22, [#allocation6], %s960_s8, %s960_s8, %s961_s9  }
  0x29   : > { %p25_p1 = scmp.eq.s32.totalorder %s24_s26, 0  ;;  %p34_p2 = scmp.ne.s32.totalorder %s953_s14, %s949_s13 }
  0x2a   : > { %p35_p4 = scmp.eq.s32.totalorder %s957_s15, 0  ;;  %p767_p6 = scmp.lt.s32.totalorder %s957_s15, 4 }
  0x2b   : > { %s1072_s17 = scalar_select %p25_p1, %s953_s14, %s27_s25  }
  0x2c   : > { %p36_p8 = por %p35_p4, %p34_p2  ;;  %p1260_p11 = scmp.eq.s32.totalorder %s1011_s16, 3 }
  0x2d   : > { %s148_s23 = sand.u32 1, %s953_s14   ;;  %s716_s27 = sshll.u32 %s957_s15, 8 }
  0x2e   : > { %p1076_p12 = por %p1260_p11, %p34_p2  ;;  %s692_s28 = sshll.u32 %s148_s23, 4 }
  0x2f   : > { %s1085_s4 = scalar_lea.hbm %s1249_s0, %s716_s27  ;;  %s152_s22 = scalar_lea.vmem [#allocation2], %s692_s28 }
  0x30   : > { %s160_s25 = sshll.u32 %s152_s22, 4  ;;  %p1087_p10 = pnand %p767_p6, %p36_p8  ;;  %s1091_s25 = int_to_ptr.vmem [resolvable:$true] %s160_s25 }
  0x31   : > { %s1093_s5 = scalar_lea.sflag [#allocation3], %s148_s23  ;;  %s857_s6 = scalar_lea.hbm %s1085_s4, 256 }
  0x32   : > { %p858_p13 = scmp.ne.s32.totalorder %s1085_s4, %s857_s6  ;;  %p859_p0 = pneg %p1087_p10 }
  0x33   : > { %s862_s11 = scalar_lea.hbm %s1249_s0, 1024  ;;  %p863_p7 = scmp.lt.u32.totalorder %s1085_s4, %s1249_s0 }
  0x34   : > { %p860_p3 = pnand %p859_p0, %p858_p13  ;;  %p864_p9 = scmp.lt.u32.totalorder %s862_s11, %s857_s6 }
  0x35   : > { %p866_p2 = scmp.lt.u32.totalorder %s857_s6, %s1085_s4 }
  0x36   : > { %p861_p5 = pneg %p860_p3  ;;  %p865_p1 = por %p864_p9, %p863_p7 }
  0x38   : > { %p867_p4 = por %p866_p2, %p865_p1 }
  0x3a   : > { %p868_p6 = pnand %p867_p4, %p861_p5 }
  0x3c   : > { %871 = shalt.err (!%p868_p6)
}
  0x3d   : > { %s872_s23 = scalar_lea.vmem %s1091_s25, 256  ;;  %s962_s29 = smov [#allocation2]  }
  0x3e   : > { %p873_p8 = scmp.ne.s32.totalorder %s1091_s25, %s872_s23  ;;  %s877_s30 = sshll.u32 %s962_s29, 4  ;;  %s878_s30 = int_to_ptr.vmem [resolvable:$false] %s877_s30 }
  0x3f   : > { %s879_s22 = scalar_lea.vmem %s878_s30, 512  ;;  %p880_p3 = scmp.lt.s32.totalorder %s1091_s25, %s878_s30 }
  0x40   : > { %p875_p11 = pnand %p873_p8, %p859_p0  ;;  %p881_p7 = scmp.lt.s32.totalorder %s879_s22, %s872_s23 }
  0x42   : > { %p876_p13 = pneg %p875_p11  ;;  %p882_p9 = por %p881_p7, %p880_p3 }
  0x44   : > { %p883_p1 = pnand %p882_p9, %p876_p13 }
  0x46   : > { %886 = shalt.err (!%p883_p1)
}
  0x47   : > { %761 = dma.hbm_to_vmem [thread:$0]  (!%p1087_p10), %s1085_s4, 256, %s1091_s25, %s1093_s5, %s960_s8, %s960_s8, %s961_s9  }
  0x48   : > { %p1263_p0 = scmp.ne.s32.totalorder %s1258_s20, 0 }
  0x49   : > { %s1127_s6 = sand.u32 (!%p1263_p0), 1, %s949_s13   ;;  %p1264_p5 = scmp.ne.s32.totalorder (!%p1263_p0), %s1256_s18, 0 }
  0x4a   : > { %172 = sbr.rel (%p1263_p0) target bundleno = 719 (0x2cf), region = 32  ;;  %s697_s7 = sshll.u32 (!%p1263_p0), %s1127_s6, 4 }
  0x4b   : > { %s175_s10 = scalar_lea.sflag (!%p1263_p0), [#allocation3], %s1127_s6  ;;  %s178_s11 = scalar_lea.vmem (!%p1263_p0), [#allocation2], %s697_s7 }
  0x51   : > { %932 = dma.done.wait (%p1264_p5), %s175_s10, 256  }
  0x52   : > { %934 = vsyncadd (%p1264_p5), %s175_s10, 4294967040  ;;  %p1265_p2 = scmp.eq.s32.totalorder %s1011_s16, 0 }
  0x54   : > { %936 = dma.done.wait (%p1265_p2), [#allocation6], 1024   ;;  %p1266_p10 = pmov %p1265_p2 }
  0x55   : > { %v1139_v0 = vld [vmem:[%s178_s11 + $0x4] sm:$0xf]  ;;  %v1141_v1 = vld [vmem:[%s178_s11 + $0xc] sm:$0xf]  ;;  %v1143_v2 = vld [vmem:[%s178_s11] sm:$0xf]  ;;  %v233_v29 = vlaneseq }
  0x56   : > { %938 = vsyncadd (%p1266_p10), [#allocation6], 4294966272  ;;  %v342_v3 = vcombine.low %v1139_v0, %v1141_v1  ;;  %v348_v4 = vmul.f32 %v1139_v0, %v1139_v0  ;;  %v349_v5 = vmul.f32 %v1141_v1, %v1141_v1  ;;  %v1151_v6 = vld [vmem:[%s178_s11 + $0x8] sm:$0xf]  ;;  %v219_v7 = vmul.f32 %v1143_v2, %v1143_v2  ;;  %s963_s18 = smov 96   ;;  %v813_v43 = vld [vmem:[#allocation5] sm:$0xff]  }
  0x57   : > { %v211_v8 = vcombine.low %v1143_v2, %v1151_v6  ;;  %v220_v9 = vmul.f32 %v1151_v6, %v1151_v6  ;;  %vm213_vm0 = vcmask 261120   ;;  %v964_v27 = vmov 839922192   ;;  %v814_v45 = vld [vmem:[#allocation5 + $0x8] sm:$0xff]   ;;  %v815_v51 = vld [vmem:[#allocation5 + $0x10] sm:$0xff]   ;;  %v816_v55 = vld [vmem:[#allocation5 + $0x18] sm:$0xff]  }
  0x58   : > { %405 = vrot.lane.b32.xlu0 %v342_v3, %s963_s18  ;;  %v352_v10 = vcombine.low %v348_v4, %v349_v5  ;;  %v344_v12 = vsel %vm213_vm0, %v342_v3, 0.0  ;;  %v231_v28 = vunpack.c.l.s4 %v964_v27  ;;  %v965_v30 = vmov 1985246804   ;;  %s967_s20 = smov 64   ;;  %v817_v57 = vld [vmem:[#allocation5 + $0x20] sm:$0xff]   ;;  %v818_v58 = vld [vmem:[#allocation5 + $0x28] sm:$0xff]  }
  0x59   : > { %276 = vrot.lane.b32.xlu1 %v211_v8, %s963_s18  ;;  %v223_v11 = vcombine.low %v219_v7, %v220_v9  ;;  %v214_v17 = vsel %vm213_vm0, %v211_v8, 0.0  ;;  %v238_v31 = vunpack.c.l.s4 %v965_v30  ;;  %v234_v36 = vshrl.u32 %v233_v29, 7  ;;  %v819_v59 = vld [vmem:[#allocation5 + $0x30] sm:$0xff]   ;;  %v820_v60 = vld [vmem:[#allocation5 + $0x38] sm:$0xff]   ;;  %s699_s8 = sshll.u32 %s1127_s6, 3  ;;  %s712_s25 = sshll.u32 %s1011_s16, 7 }
  0x5a   : > { %v354_v13 = vsel %vm213_vm0, %v352_v10, 0.0  ;;  %v232_v35 = vunpack.c.0.s8 %v231_v28  ;;  %v966_v44 = vmov 0.0   ;;  %vm968_vm1 = vmmov 0   ;;  %s204_s26 = scalar_lea.vmem [#allocation7], %s699_s8  ;;  %s1206_s23 = scalar_lea.hbm %s1252_s3, %s712_s25 }
  0x5b   : > { %v225_v21 = vsel %vm213_vm0, %v223_v11, 0.0  ;;  %v239_v37 = vunpack.c.0.s8 %v238_v31  ;;  %726 = vmatprep.subr.bf16.mxu0 %v966_v44  ;;  %742 = vmatprep.mubr.msk.bf16.mxu0 %vm968_vm1, %v966_v44  ;;  %vm475_vm2 = vcmask 523264   ;;  %vm478_vm3 = vcmask 785408   ;;  %s608_s5 = sshll.u32 %s204_s26, 4  ;;  %s595_s29 = scalar_lea.sflag [#allocation4], %s1127_s6  ;;  %s1208_s5 = int_to_ptr.vmem [resolvable:$true] %s608_s5 }
  0x5c   : > { %412 = vrot.lane.b32.xlu0 %v352_v10, %s963_s18  ;;  %v1167_v39 = vsub.s32 %v232_v35, %v234_v36  ;;  %727 = vmatpush3.bf16.msra.mxu0 %v813_v43  ;;  %s887_s16 = scalar_lea.vmem %s1208_s5, 128  ;;  %s969_s30 = smov [#allocation7]  }
  0x5d   : > { %283 = vrot.lane.b32.xlu1 %v223_v11, %s963_s18  ;;  %v1169_v40 = vsub.s32 %v239_v37, %v234_v36  ;;  %728 = vmatprep.subr.bf16.mxu0 %v966_v44  ;;  %p888_p4 = scmp.ne.s32.totalorder %s1208_s5, %s887_s16  ;;  %s891_s22 = sshll.u32 %s969_s30, 4  ;;  %s892_s22 = int_to_ptr.vmem [resolvable:$false] %s891_s22 }
  0x5e   : > { %s893_s7 = scalar_lea.vmem %s892_s22, 256  ;;  %p894_p11 = scmp.lt.s32.totalorder %s1208_s5, %s892_s22 }
  0x5f   : > { %p889_p6 = pnand %p888_p4, %p1076_p12  ;;  %p895_p13 = scmp.lt.s32.totalorder %s893_s7, %s887_s16 }
  0x60   : > { %729 = vmatpush3.bf16.msra.mxu0 %v814_v45 }
  0x61   : > { %730 = vmatprep.subr.bf16.mxu0 %v966_v44  ;;  %p890_p8 = pneg %p889_p6  ;;  %p896_p3 = por %p895_p13, %p894_p11 }
  0x63   : > { %p897_p7 = pnand %p896_p3, %p890_p8 }
  0x64   : > { %731 = vmatpush3.bf16.msra.mxu0 %v815_v51 }
  0x65   : > { %732 = vmatprep.subr.bf16.mxu0 %v966_v44 }
  0x68   : > { %733 = vmatpush3.bf16.msra.mxu0 %v816_v55 }
  0x69   : > { %734 = vmatprep.subr.bf16.mxu0 %v966_v44 }
  0x6c   : > { %735 = vmatpush3.bf16.msra.mxu0 %v817_v57 }
  0x6d   : > { %736 = vmatprep.subr.bf16.mxu0 %v966_v44 }
  0x70   : > { %737 = vmatpush3.bf16.msra.mxu0 %v818_v58 }
  0x71   : > { %738 = vmatprep.subr.bf16.mxu0 %v966_v44 }
  0x74   : > { %739 = vmatpush3.bf16.msra.mxu0 %v819_v59 }
  0x75   : > { %740 = vmatprep.subr.bf16.mxu0 %v966_v44 }
  0x78   : > { %741 = vmatpush3.bf16.msra.mxu0 %v820_v60 }
  0x7b   : > { %345 = vadd.xlane.f32.xlu0 %v344_v12 }
  0x7f   : > { %355 = vadd.xlane.f32.xlu0 %v354_v13 }
  0xca   : > { %v406_v14 = vpop.permute.xlu0 %405 }
  0xcb   : > { %v408_v15 = vsel %vm213_vm0, %v406_v14, 0.0  ;;  %v277_v16 = vpop.permute.xlu1 %276 }
  0xcc   : > { %409 = vadd.xlane.f32.xlu1 %v408_v15  ;;  %v279_v20 = vsel %vm213_vm0, %v277_v16, 0.0 }
  0xce   : > { %v413_v18 = vpop.permute.xlu0 %412 }
  0xcf   : > { %v415_v19 = vsel %vm213_vm0, %v413_v18, 0.0  ;;  %v284_v22 = vpop.permute.xlu1 %283 }
  0xd0   : > { %416 = vadd.xlane.f32.xlu0 %v415_v19  ;;  %215 = vadd.xlane.f32.xlu1 %v214_v17  ;;  %v286_v23 = vsel %vm213_vm0, %v284_v22, 0.0 }
  0xd4   : > { %280 = vadd.xlane.f32.xlu0 %v279_v20  ;;  %226 = vadd.xlane.f32.xlu1 %v225_v21 }
  0xd8   : > { %287 = vadd.xlane.f32.xlu0 %v286_v23 }
 0x108   : > { %v346_v24 = vpop.xlane.xlu0 %345 }
 0x109   : > { %v347_v25 = vmul.f32 0.03125, %v346_v24 }
 0x10b   : > { %v377_v26 = vmul.f32 %v347_v25, %v347_v25  ;;  %v365_v41 = vrot.slane %v347_v25, %v1167_v39  ;;  %v372_v42 = vrot.slane %v347_v25, %v1169_v40 }
 0x10c   : > { %v356_v32 = vpop.xlane.xlu0 %355 }
 0x10d   : > { %v357_v33 = vmul.f32 0.03125, %v356_v32  ;;  %v375_v46 = vsub.f32 %v1139_v0, %v365_v41  ;;  %v376_v47 = vsub.f32 %v1141_v1, %v372_v42 }
 0x10f   : > { %v378_v34 = vsub.f32 %v357_v33, %v377_v26 }
 0x111   : > { %v379_v38 = vadd.f32 1e-05, %v378_v34 }
 0x113   : > { %821 = vrsqrt.f32 %v379_v38 }
 0x11d   : > { %v822_v48 = vpop.eup %821 }
 0x11e   : > { %v388_v49 = vrot.slane %v822_v48, %v1167_v39  ;;  %v395_v50 = vrot.slane %v822_v48, %v1169_v40 }
 0x120   : > { %v398_v52 = vmul.f32 %v388_v49, %v375_v46  ;;  %v399_v53 = vmul.f32 %v395_v50, %v376_v47 }
 0x122   : > { %v402_v54 = vcombine.low %v398_v52, %v399_v53 }
 0x124   : > { %v404_v56 = vpack.c.bf16 %v402_v54, %v402_v54 }
 0x126   : > { %467 = vrot.lane.b32.xlu1 %v404_v56, %s967_s20 }
 0x159   : > { %v410_v61 = vpop.xlane.xlu1 %409 }
 0x15a   : > { %v411_v62 = vmul.f32 0.03125, %v410_v61 }
 0x15c   : > { %v438_v4 = vmul.f32 %v411_v62, %v411_v62  ;;  %v426_v8 = vrot.slane %v411_v62, %v1167_v39  ;;  %v433_v9 = vrot.slane %v411_v62, %v1169_v40 }
 0x15d   : > { %v417_v63 = vpop.xlane.xlu0 %416  ;;  %v216_v19 = vpop.xlane.xlu1 %215 }
 0x15e   : > { %v418_v3 = vmul.f32 0.03125, %v417_v63  ;;  %v436_v11 = vsub.f32 %v1139_v0, %v426_v8  ;;  %v437_v12 = vsub.f32 %v1141_v1, %v433_v9  ;;  %v218_v21 = vmul.f32 0.03125, %v216_v19 }
 0x160   : > { %v439_v5 = vsub.f32 %v418_v3, %v438_v4  ;;  %v248_v25 = vmul.f32 %v218_v21, %v218_v21  ;;  %v236_v33 = vrot.slane %v218_v21, %v1167_v39  ;;  %v243_v34 = vrot.slane %v218_v21, %v1169_v40 }
 0x161   : > { %v281_v20 = vpop.xlane.xlu0 %280  ;;  %v227_v23 = vpop.xlane.xlu1 %226 }
 0x162   : > { %v440_v7 = vadd.f32 1e-05, %v439_v5  ;;  %v282_v22 = vmul.f32 0.03125, %v281_v20  ;;  %v228_v0 = vmul.f32 0.03125, %v227_v23  ;;  %v246_v41 = vsub.f32 %v1143_v2, %v236_v33 }
 0x163   : > { %v247_v42 = vsub.f32 %v1151_v6, %v243_v34 }
 0x164   : > { %823 = vrsqrt.f32 %v440_v7  ;;  %v309_v26 = vmul.f32 %v282_v22, %v282_v22  ;;  %v249_v27 = vsub.f32 %v228_v0, %v248_v25  ;;  %v297_v31 = vrot.slane %v282_v22, %v1167_v39 }
 0x165   : > { %v288_v24 = vpop.xlane.xlu0 %287  ;;  %v304_v32 = vrot.slane %v282_v22, %v1169_v40 }
 0x166   : > { %v289_v1 = vmul.f32 0.03125, %v288_v24  ;;  %v250_v29 = vadd.f32 1e-05, %v249_v27  ;;  %v307_v37 = vsub.f32 %v1143_v2, %v297_v31 }
 0x167   : > { %v308_v38 = vsub.f32 %v1151_v6, %v304_v32 }
 0x168   : > { %v310_v28 = vsub.f32 %v289_v1, %v309_v26  ;;  %825 = vrsqrt.f32 %v250_v29 }
 0x16a   : > { %v311_v30 = vadd.f32 1e-05, %v310_v28 }
 0x16c   : > { %827 = vrsqrt.f32 %v311_v30 }
 0x16e   : > { %v824_v10 = vpop.eup %823 }
 0x16f   : > { %v449_v13 = vrot.slane %v824_v10, %v1167_v39  ;;  %v456_v14 = vrot.slane %v824_v10, %v1169_v40 }
 0x171   : > { %v459_v15 = vmul.f32 %v449_v13, %v436_v11  ;;  %v460_v16 = vmul.f32 %v456_v14, %v437_v12 }
 0x172   : > { %v826_v35 = vpop.eup %825 }
 0x173   : > { %v463_v17 = vcombine.low %v459_v15, %v460_v16  ;;  %v259_v43 = vrot.slane %v826_v35, %v1167_v39  ;;  %v266_v44 = vrot.slane %v826_v35, %v1169_v40 }
 0x175   : > { %v465_v18 = vpack.c.bf16 %v463_v17, %v463_v17  ;;  %v269_v47 = vmul.f32 %v259_v43, %v246_v41  ;;  %v270_v48 = vmul.f32 %v266_v44, %v247_v42 }
 0x176   : > { %v828_v36 = vpop.eup %827 }
 0x177   : > { %470 = vrot.lane.b32.xlu0 %v465_v18, %s967_s20  ;;  %v320_v45 = vrot.slane %v828_v36, %v1167_v39  ;;  %v327_v46 = vrot.slane %v828_v36, %v1169_v40  ;;  %v273_v51 = vcombine.low %v269_v47, %v270_v48  ;;  %v702_v40 = vld [vmem:[%s1251_s2] ss:$0 sm:$0xff] }
 0x179   : > { %v330_v49 = vmul.f32 %v320_v45, %v307_v37  ;;  %v331_v50 = vmul.f32 %v327_v46, %v308_v38  ;;  %v275_v53 = vpack.c.bf16 %v273_v51, %v273_v51 }
 0x17b   : > { %v334_v52 = vcombine.low %v330_v49, %v331_v50 }
 0x17d   : > { %v336_v2 = vpack.c.bf16 %v334_v52, %v334_v52 }
 0x17f   : > { %v474_v6 = vsel %vm213_vm0, %v275_v53, %v336_v2 }
 0x198   : > { %v468_v54 = vpop.permute.xlu1 %467 }
 0x199   : > { %v477_v55 = vsel %vm475_vm2, %v474_v6, %v468_v54 }
 0x1e9   : > { %v471_v56 = vpop.permute.xlu0 %470 }
 0x1ea   : > { %v480_v39 = vsel %vm478_vm3, %v477_v55, %v471_v56 }
 0x1eb   : > { %743 = vmatmul.mubr.bf16.vlgmr.msra.gmra.mrb[0].mxu0 %v480_v39 }
 0x2be   : > { %v587_v57 = vpop.f32.mrb[0].mxu0 }
 0x2bf   : > { %v588_v58 = vadd.f32 %v702_v40, %v587_v57  ;;  %v744_v59 = vpop.f32.mrb[1].mxu0 }
 0x2c0   : > { %v590_v60 = vpop.f32.mrb[2].mxu0 }
 0x2c1   : > { %593 = vst [vmem:[%s204_s26] sm:$0xff] %v588_v58  ;;  %v745_v61 = vpop.f32.mrb[3].mxu0 }
 0x2c2   : > { %900 = shalt.err (!%p897_p7)
}
 0x2c3   : > { %s901_s6 = scalar_lea.hbm %s1206_s23, 128  ;;  %s905_s18 = scalar_lea.hbm %s1252_s3, 512 }
 0x2c4   : > { %p902_p9 = scmp.ne.s32.totalorder %s1206_s23, %s901_s6  ;;  %p906_p5 = scmp.lt.u32.totalorder %s1206_s23, %s1252_s3 }
 0x2c5   : > { %p907_p2 = scmp.lt.u32.totalorder %s905_s18, %s901_s6  ;;  %p909_p4 = scmp.lt.u32.totalorder %s901_s6, %s1206_s23 }
 0x2c6   : > { %p903_p1 = pnand %p902_p9, %p1076_p12 }
 0x2c7   : > { %p908_p10 = por %p907_p2, %p906_p5 }
 0x2c8   : > { %p904_p0 = pneg %p903_p1 }
 0x2c9   : > { %p910_p6 = por %p909_p4, %p908_p10 }
 0x2cb   : > { %p911_p8 = pnand %p910_p6, %p904_p0 }
 0x2cd   : > { %914 = shalt.err (!%p911_p8)
}
 0x2ce   : > { %752 = dma.vmem_to_hbm [thread:$0]  (%p1076_p12), %s1208_s5, 128, %s1206_s23, %s595_s29  }
 0x2cf PF: > { %p769_p11 = scmp.ge.s32.totalorder %s957_s15, 2  ;;  %s620_s9 = sand.u32 1, %s945_s12  }
 0x2d0   : > { %p1267_p13 = scmp.ne.s32.totalorder %s1257_s19, 0  ;;  %s621_s4 = scalar_lea.sflag [#allocation4], %s620_s9 }
 0x2d2   : > { %p763_p3 = pnand %p769_p11, %p1267_p13 }
 0x2d4   : > { %940 = dma.done.wait (!%p763_p3), %s621_s4, 128  }
 0x2d5   : > { %942 = vsyncadd (!%p763_p3), %s621_s4, 4294967168  ;;  %p17_p7 = scmp.ge.s32.totalorder %s1043_s24, 6   ;;  %s1268_s12 = smov %s949_s13 }
 0x2d6   : > { %s1269_s13 = smov %s953_s14  ;;  %s1270_s14 = smov %s1072_s17 }
 0x2d7   : > { %s1271_s15 = smov %s1043_s24  ;;  %19 = sbr.rel (!%p17_p7) target bundleno = 6 (0x6), region = 82 }
 0x2de   :  { %626 = vsyncpa [#allocation3], 1 }
 0x2df   :  { %628 = vsyncpa [#allocation3 + $0x1], 1 }
 0x2e0   :  { %629 = vsyncpa [#allocation6], 1 }
 0x2e1   :  { %630 = vsyncpa [#allocation4], 1 }
 0x2e2   :  { %632 = vsyncpa [#allocation4 + $0x1], 1 }

</bundles_post_ra>
